<compile_context>
chip_gen: v7x
topology: tpu7x:2x2x1
jax: 0.10.0
libtpu: 0.0.40
codegen_flags: <defaults>
</compile_context>

<pallas_src>
import jax
import jax.numpy as jnp
from jax.experimental import pallas as pl
from jax.experimental.pallas import tpu as pltpu


_LANE = 128                       # lane-dense last dim (minimises pad frequency)
_SUB = 8                          # sublane rows in the per-tile partials block
_TARGET_BLOCK_BYTES = 2 * 1024 * 1024   # per-input block (native dtype)
_VMEM_LIMIT_BYTES = 32 * 1024 * 1024    # explicit scoped-VMEM limit (v5e default is 16 MiB)


def _round_up(a, b):
    return (a + b - 1) // b * b


def _sublane_gran(dtype):
    """Sublane packing granularity: 8 for 4-byte, 16 for 2-byte, 32 for 1-byte."""
    itemsize = jnp.dtype(dtype).itemsize
    return 8 * max(1, 4 // itemsize)


class PallasDenoiser:
    """Concrete Pallas counterpart of AbstractDenoiser (loss_function = MSE)."""

    def __init__(self, loss_function="mse"):
        assert loss_function is not None, 'the param "loss_function" must be not None!'
        self.loss_function = loss_function  # only 'mse' is instantiated here

    # -- forward --------------------------------------------------------------
    def forward(self, x):
        # TODO(synk): abstract forward() has no concrete computation in the
        # reference; identity pass-through with no kernel and no copy.
        return x

    # -- loss -----------------------------------------------------------------
    @staticmethod
    def _to_lane_dense(a):
        """Flatten to (rows, _LANE).  Reshape is free; pad only if total % 128 != 0."""
        flat = a.reshape(-1)
        total = flat.shape[0]
        rem = total % _LANE
        if rem:
            # TODO(synk): this pad re-materializes the operand in HBM; only hit
            # when the element count is not a multiple of 128.
            flat = jnp.pad(flat, (0, _LANE - rem))
        rows = flat.shape[0] // _LANE
        return flat.reshape(rows, _LANE)

    def compute_loss(self, inputs, targets):
        """Scalar MSE loss ('mean' reduction) between inputs and targets."""
        assert inputs.shape == targets.shape, "inputs/targets shape mismatch"
        total = 1
        for s in inputs.shape:
            total *= s
        assert total > 0, "empty input"

        # Lane-dense 2-D views, kept in the caller's (possibly narrow) dtype.
        p2d = self._to_lane_dense(inputs)
        t2d = self._to_lane_dense(targets)
        rows = p2d.shape[0]

        # Row-tile selection: dtype-aware sublane granularity, ~2 MiB per input block.
        gran = max(_sublane_gran(inputs.dtype), _sublane_gran(targets.dtype))
        row_bytes = _LANE * max(jnp.dtype(inputs.dtype).itemsize,
                                jnp.dtype(targets.dtype).itemsize)
        tm_cap = max(gran, (_TARGET_BLOCK_BYTES // row_bytes) // gran * gran)

        if rows % gran == 0:
            tm = min(tm_cap, rows)
        elif rows <= tm_cap:
            tm = rows            # block == full second-minor dim: always legal
        else:
            tm = tm_cap
        num_tiles = pl.cdiv(rows, tm)
        needs_mask = (rows % tm) != 0   # ragged last tile handled in-kernel (no pad)

        def kernel(p_ref, t_ref, out_ref):
            d = p_ref[...].astype(jnp.float32) - t_ref[...].astype(jnp.float32)
            sq = d * d
            if needs_mask:
                row_idx = (jax.lax.broadcasted_iota(jnp.int32, (tm, 1), 0)
                           + pl.program_id(0) * tm)
                sq = jnp.where(row_idx < rows, sq, 0.0)
            # Per-lane partial sums for this tile; cross-lane/tile reduce happens
            # in the wrapper (tree reduction -> better numerics, no serialization).
            lane_partials = jnp.sum(sq, axis=0, keepdims=True)          # (1, _LANE)
            out_ref[...] = jnp.broadcast_to(lane_partials, (1, _SUB, _LANE))

        itemsize_p = jnp.dtype(inputs.dtype).itemsize
        itemsize_t = jnp.dtype(targets.dtype).itemsize
        cost = pl.CostEstimate(
            flops=3 * total,
            transcendentals=0,
            bytes_accessed=total * (itemsize_p + itemsize_t)
                           + num_tiles * _SUB * _LANE * 4,
        )

        partials = pl.pallas_call(
            kernel,
            out_shape=jax.ShapeDtypeStruct((num_tiles, _SUB, _LANE), jnp.float32),
            grid=(num_tiles,),
            in_specs=[
                pl.BlockSpec((tm, _LANE), lambda i: (i, 0)),
                pl.BlockSpec((tm, _LANE), lambda i: (i, 0)),
            ],
            out_specs=pl.BlockSpec((1, _SUB, _LANE), lambda i: (i, 0, 0)),
            compiler_params=pltpu.CompilerParams(
                dimension_semantics=("parallel",),
                vmem_limit_bytes=_VMEM_LIMIT_BYTES,
            ),
            cost_estimate=cost,
        )(p2d, t2d)

        # Row 0 of each tile's block holds the per-lane partials; XLA tree-sums.
        sumsq = jnp.sum(partials[:, 0, :], dtype=jnp.float32)
        return sumsq / jnp.float32(total)


# ----------------------------------------------------------------------------
# Demo / self-test
# ----------------------------------------------------------------------------
if __name__ == "__main__":
    key = jax.random.PRNGKey(0)
    k1, k2, k3, k4, k5, k6 = jax.random.split(key, 6)

    model = PallasDenoiser(loss_function="mse")

    # Primary small shape consistent with an image denoiser: N=2, C=4, H=W=16.
    x = jax.random.normal(k1, (2, 4, 16, 16), dtype=jnp.float32)
    target = jax.random.normal(k2, (2, 4, 16, 16), dtype=jnp.float32)

    y = jax.block_until_ready(model.forward(x))
    assert y.shape == x.shape and y.dtype == x.dtype
    assert jnp.array_equal(y, x), "forward pass-through mismatch"

    loss = jax.block_until_ready(model.compute_loss(y, target))
    ref_loss = jnp.mean((x - target) ** 2)
    assert jnp.allclose(loss, ref_loss, rtol=1e-4, atol=1e-6), "loss mismatch"

    # Multi-tile + ragged last tile (rows=8190, tm=4096 -> 2 tiles, in-kernel mask,
    # no wrapper padding since total % 128 == 0).
    xb = jax.random.normal(k3, (7, 9, 130, 128), dtype=jnp.float32)
    tb = jax.random.normal(k4, (7, 9, 130, 128), dtype=jnp.float32)
    loss_b = jax.block_until_ready(model.compute_loss(xb, tb))
    ref_b = jnp.mean((xb - tb) ** 2)
    assert jnp.allclose(loss_b, ref_b, rtol=1e-4, atol=1e-6), "tiled/masked loss mismatch"

    # bf16 inputs streamed at native width (cast to f32 inside the kernel).
    xh = jax.random.normal(k5, (2, 4, 16, 16), dtype=jnp.bfloat16)
    th = jax.random.normal(k6, (2, 4, 16, 16), dtype=jnp.bfloat16)
    loss_h = jax.block_until_ready(model.compute_loss(xh, th))
    ref_h = jnp.mean((xh.astype(jnp.float32) - th.astype(jnp.float32)) ** 2)
    assert jnp.allclose(loss_h, ref_h, rtol=1e-3, atol=1e-5), "bf16 loss mismatch"

    # Element count not a multiple of 128 -> exercises the rare pad fallback.
    xs = jax.random.normal(k1, (2, 3, 5, 7), dtype=jnp.float32)
    ts = jax.random.normal(k2, (2, 3, 5, 7), dtype=jnp.float32)
    loss_s = jax.block_until_ready(model.compute_loss(xs, ts))
    ref_s = jnp.mean((xs - ts) ** 2)
    assert jnp.allclose(loss_s, ref_s, rtol=1e-4, atol=1e-6), "pad-path loss mismatch"

    print("KERNEL_OK")
</pallas_src>

<mosaic_0001>
module attributes {stable_mosaic.version = 11 : i64} {
  func.func @kernel(%arg0: i32, %arg1: memref<16x128xf32, #tpu.memory_space<vmem>>, %arg2: memref<16x128xf32, #tpu.memory_space<vmem>>, %arg3: memref<1x8x128xf32, #tpu.memory_space<vmem>>) attributes {dimension_semantics = [#tpu.dimension_semantics<parallel>], iteration_bounds = array<i64: 1>, scalar_prefetch = 0 : i64, scratch_operands = 0 : i64, tpu.core_type = #tpu.core_type<tc>, window_params = [{transform_indices = @transform_0, window_bounds = array<i64: 16, 128>}, {transform_indices = @transform_1, window_bounds = array<i64: 16, 128>}, {transform_indices = @transform_2, window_bounds = array<i64: 1, 8, 128>}]} {
    %c0 = arith.constant 0 : index
    %c0_0 = arith.constant 0 : index
    %0 = vector.load %arg1[%c0, %c0_0] : memref<16x128xf32, #tpu.memory_space<vmem>>, vector<16x128xf32>
    %c0_1 = arith.constant 0 : index
    %c0_2 = arith.constant 0 : index
    %1 = vector.load %arg2[%c0_1, %c0_2] : memref<16x128xf32, #tpu.memory_space<vmem>>, vector<16x128xf32>
    %2 = arith.subf %0, %1 : vector<16x128xf32>
    %3 = arith.mulf %2, %2 : vector<16x128xf32>
    %cst = arith.constant dense<0.000000e+00> : vector<128xf32>
    %4 = vector.multi_reduction <add>, %3, %cst [0] : vector<16x128xf32> to vector<128xf32>
    %5 = vector.shape_cast %4 : vector<128xf32> to vector<1x128xf32>
    %6 = vector.shape_cast %5 : vector<1x128xf32> to vector<1x1x128xf32>
    %7 = vector.broadcast %6 : vector<1x1x128xf32> to vector<1x8x128xf32>
    %c0_3 = arith.constant 0 : index
    %c0_4 = arith.constant 0 : index
    %c0_5 = arith.constant 0 : index
    %8 = vector.load %arg3[%c0_3, %c0_4, %c0_5] : memref<1x8x128xf32, #tpu.memory_space<vmem>>, vector<1x8x128xf32>
    tpu.vector_store %arg3[%c0_3, %c0_4, %c0_5], %7 {strides = array<i32>} : memref<1x8x128xf32, #tpu.memory_space<vmem>>, vector<1x8x128xf32>,
    return
  }
  func.func @transform_0(%arg0: i32) -> (i32, i32) {
    %c0_i32 = arith.constant 0 : i32
    %c0_i32_0 = arith.constant 0 : i32
    return %arg0, %c0_i32 : i32, i32
  }
  func.func @transform_1(%arg0: i32) -> (i32, i32) {
    %c0_i32 = arith.constant 0 : i32
    %c0_i32_0 = arith.constant 0 : i32
    return %arg0, %c0_i32 : i32, i32
  }
  func.func @transform_2(%arg0: i32) -> (i32, i32, i32) {
    %c0_i32 = arith.constant 0 : i32
    %c0_i32_0 = arith.constant 0 : i32
    %c0_i32_1 = arith.constant 0 : i32
    return %arg0, %c0_i32, %c0_i32_0 : i32, i32, i32
  }
}

</mosaic_0001>

<bundles_post_ra>
// kernel: tpu_custom_call.1
= control target key start
LH: loop header
LB: loop body
LE: loop exit
PB: predicated region body
PF: predicated region fallthrough
CT: control target
= control target key end

     0   :  { %7 = vsyncpa [#allocation3], 0  ;;  %s205_s0 = inlined_call_operand.hbm [shape: f32[16,128], index: 0, kind: input, shape index: {}]   ;;  %s206_s1 = inlined_call_operand.hbm [shape: f32[16,128], index: 1, kind: input, shape index: {}]   ;;  %s207_s2 = inlined_call_operand.hbm [shape: f32[1,8,128], index: 2, kind: output, shape index: {}]  }
   0x1   :  { %8 = vsyncpa [#allocation6], 0 }
   0x2   :  { %9 = vsyncpa [#allocation4], 0  ;;  %s149_s9 = smov [#allocation2]   ;;  %s77_s13 = scalar_lea.hbm %s205_s0, 256 }
   0x3   :  { %s15_s10 = sshll.u32 %s149_s9, 4  ;;  %p78_p0 = scmp.ne.s32.totalorder %s205_s0, %s77_s13  ;;  %s16_s10 = int_to_ptr.vmem [resolvable:$true] %s15_s10 }
   0x4   :  { %p81_p1 = scmp.lt.u32.totalorder %s77_s13, %s205_s0 }
   0x6   :  { %p83_p2 = pnand %p81_p1, %p78_p0 }
   0x8   :  { %86 = shalt.err (!%p83_p2)
}
   0x9   :  { %s87_s18 = scalar_lea.vmem %s16_s10, 256  ;;  %p92_p4 = scmp.lt.s32.totalorder %s16_s10, %s16_s10 }
   0xa   :  { %p88_p3 = scmp.ne.s32.totalorder %s16_s10, %s87_s18  ;;  %p93_p5 = scmp.lt.s32.totalorder %s87_s18, %s87_s18 }
   0xc   :  { %p94_p6 = por %p93_p5, %p92_p4 }
   0xe   :  { %p95_p7 = pnand %p94_p6, %p88_p3 }
  0x10   :  { %98 = shalt.err (!%p95_p7)
}
  0x11   :  { %s150_s19 = smov 128   ;;  %s151_s20 = smov 8  }
  0x12   :  { %21 = dma.hbm_to_vmem [thread:$0]  %s205_s0, 256, %s16_s10, [#allocation3], %s150_s19, %s150_s19, %s151_s20  }
  0x13   :  { %s152_s23 = smov [#allocation5]   ;;  %s99_s27 = scalar_lea.hbm %s206_s1, 256 }
  0x14   :  { %s27_s24 = sshll.u32 %s152_s23, 4  ;;  %p100_p8 = scmp.ne.s32.totalorder %s206_s1, %s99_s27  ;;  %s28_s24 = int_to_ptr.vmem [resolvable:$true] %s27_s24 }
  0x15   :  { %p103_p9 = scmp.lt.u32.totalorder %s99_s27, %s206_s1 }
  0x17   :  { %p105_p10 = pnand %p103_p9, %p100_p8 }
  0x19   :  { %108 = shalt.err (!%p105_p10)
}
  0x1a   :  { %s109_s4 = scalar_lea.vmem %s28_s24, 256  ;;  %p114_p12 = scmp.lt.s32.totalorder %s28_s24, %s28_s24 }
  0x1b   :  { %p110_p11 = scmp.ne.s32.totalorder %s28_s24, %s109_s4  ;;  %p115_p13 = scmp.lt.s32.totalorder %s109_s4, %s109_s4 }
  0x1d   :  { %p116_p0 = por %p115_p13, %p114_p12 }
  0x1f   :  { %p117_p1 = pnand %p116_p0, %p110_p11 }
  0x21   :  { %120 = shalt.err (!%p117_p1)
}
  0x22   :  { %33 = dma.hbm_to_vmem [thread:$0]  %s206_s1, 256, %s28_s24, [#allocation6], %s150_s19, %s150_s19, %s151_s20  }
  0x23   :  { %143 = dma.done.wait [#allocation3], 256  }
  0x24   :  { %144 = vsyncadd [#allocation3], 4294967040 }
  0x25   :  { %145 = dma.done.wait [#allocation6], 256  }
  0x26   :  { %146 = vsyncadd [#allocation6], 4294967040  ;;  %v40_v0 = vld [vmem:[#allocation2] sm:$0xff]  ;;  %v41_v1 = vld [vmem:[#allocation2 + $0x8] sm:$0xff]  ;;  %s153_s6 = smov [#allocation7]  }
  0x27   :  { %v42_v2 = vld [vmem:[#allocation5] sm:$0xff]  ;;  %v43_v3 = vld [vmem:[#allocation5 + $0x8] sm:$0xff]  ;;  %s62_s7 = sshll.u32 %s153_s6, 4  ;;  %s63_s7 = int_to_ptr.vmem [resolvable:$true] %s62_s7 }
  0x28   :  { %v44_v4 = vsub.f32 %v40_v0, %v42_v2  ;;  %v45_v5 = vsub.f32 %v41_v1, %v43_v3  ;;  %s121_s1 = scalar_lea.vmem %s63_s7, 128  ;;  %p126_p3 = scmp.lt.s32.totalorder %s63_s7, %s63_s7 }
  0x29   :  { %p122_p2 = scmp.ne.s32.totalorder %s63_s7, %s121_s1  ;;  %p127_p4 = scmp.lt.s32.totalorder %s121_s1, %s121_s1 }
  0x2a   :  { %v46_v6 = vmul.f32 %v44_v4, %v44_v4  ;;  %v47_v7 = vmul.f32 %v45_v5, %v45_v5 }
  0x2b   :  { %p128_p5 = por %p127_p4, %p126_p3 }
  0x2c   :  { %v48_v8 = vadd.f32 %v47_v7, %v46_v6 }
  0x2d   :  { %p129_p6 = pnand %p128_p5, %p122_p2 }
  0x2e   :  { %v49_v9 = vrot.slane %v48_v8, 4 }
  0x30   :  { %v50_v10 = vadd.f32 %v49_v9, %v48_v8 }
  0x32   :  { %v51_v11 = vrot.slane %v50_v10, 2 }
  0x34   :  { %v52_v12 = vadd.f32 %v51_v11, %v50_v10 }
  0x36   :  { %v53_v13 = vrot.slane %v52_v12, 1 }
  0x38   :  { %v54_v14 = vadd.f32 %v53_v13, %v52_v12 }
  0x3a   :  { %55 = vst [vmem:[#allocation7] sm:$0xff] %v54_v14 }
  0x3b   :  { %132 = shalt.err (!%p129_p6)
}
  0x3c   :  { %s133_s10 = scalar_lea.hbm %s207_s2, 128 }
  0x3d   :  { %p134_p7 = scmp.ne.s32.totalorder %s207_s2, %s133_s10  ;;  %p137_p8 = scmp.lt.u32.totalorder %s133_s10, %s207_s2 }
  0x3f   :  { %p139_p9 = pnand %p137_p8, %p134_p7 }
  0x41   :  { %142 = shalt.err (!%p139_p9)
}
  0x42   :  { %65 = dma.vmem_to_hbm [thread:$0]  %s63_s7, 128, %s207_s2, [#allocation4]  }
  0x43   :  { %147 = dma.done.wait [#allocation4], 128  }
  0x44   :  { %148 = vsyncadd [#allocation4], 4294967168 }
  0x45   :  { %69 = vsyncpa [#allocation3], 1 }
  0x46   :  { %70 = vsyncpa [#allocation6], 1 }
  0x47   :  { %71 = vsyncpa [#allocation4], 1 }

</bundles_post_ra>
